<compile_context>
chip_gen: v7x
topology: tpu7x:2x2x1
jax: 0.10.0
libtpu: 0.0.40
codegen_flags: <defaults>
</compile_context>

<pallas_src>
import functools

import jax
import jax.numpy as jnp
from jax.experimental import pallas as pl
from jax.experimental.pallas import tpu as pltpu


# ---------------------------------------------------------------------------
# Kernels
# ---------------------------------------------------------------------------
def _embed_onehot_kernel(ids_ref, table_ref, out_ref):
    """One-hot MXU gather of one (T, d_tile) output block.

    ids_ref  : VMEM [T, 1] int32        token ids for this chunk
    table_ref: VMEM [vocab, d_tile]     resident table tile (fetched once/d-tile)
    out_ref  : VMEM [T, d_tile]
    """
    t = ids_ref.shape[0]
    vocab = table_ref.shape[0]
    ids = ids_ref[...]                                          # (T, 1)
    cols = jax.lax.broadcasted_iota(jnp.int32, (t, vocab), 1)   # (T, vocab)
    one_hot = (ids == cols).astype(table_ref.dtype)             # one 1 per row
    # Exactly one non-zero per row + f32 accumulation => bit-exact gather.
    out_ref[...] = jnp.dot(
        one_hot, table_ref[...], preferred_element_type=jnp.float32
    ).astype(out_ref.dtype)


def _embed_rowcopy_kernel(ids_smem, table_ref, out_ref, *, tokens_per_step):
    """Row-copy gather fallback for vocabularies too big for a one-hot matmul.

    ids_smem : SMEM [padded_seq] int32  (scalar-prefetched token ids)
    table_ref: VMEM [vocab, d_tile]
    out_ref  : VMEM [T, d_tile]
    """
    chunk = pl.program_id(1)
    base = chunk * tokens_per_step
    # TODO(synk): batch rows into full-tile stores and block ids per chunk
    # (SMEM grows with padded_seq here); switch to a manual DMA row gather
    # for seq << vocab decode shapes.
    for t in range(tokens_per_step):            # small static unroll
        tok = ids_smem[base + t]
        out_ref[pl.ds(t, 1), :] = table_ref[pl.ds(tok, 1), :]


# ---------------------------------------------------------------------------
# Chip-aware tile / VMEM planning
# ---------------------------------------------------------------------------
def _vmem_capacity_bytes():
    try:
        return int(pltpu.get_tpu_info().vmem_capacity_bytes)
    except Exception:
        return 64 << 20          # conservative: v7x has 64 MiB per TensorCore


def _candidate_d_tiles(d_model):
    cands = [d_model]            # full width first (fewest grid steps)
    if d_model % 128 == 0:
        for t in range(d_model - 128, 0, -128):
            if d_model % t == 0:
                cands.append(t)
    return cands                 # descending


def _plan(vocab, d_model, table_itemsize, tokens_per_step, use_onehot,
          d_tile=None):
    """Pick the largest feasible d_tile and a matching vmem_limit_bytes.

    Feasibility accounts for the default x2 pipeline buffering of both the
    table slab and the output block (buffer-count-aware, per review)."""
    capacity = _vmem_capacity_bytes()
    budget = min(capacity - (8 << 20), int(0.75 * capacity))
    candidates = [d_tile] if d_tile is not None else _candidate_d_tiles(d_model)
    for dt in candidates:
        need = 2 * vocab * dt * table_itemsize                 # table, x2 bufs
        need += 2 * tokens_per_step * dt * table_itemsize      # out block, x2
        if use_onehot:
            need += 2 * tokens_per_step * 4                    # ids block, x2
            need += tokens_per_step * vocab * 4                # one-hot temp
        if need <= budget or d_tile is not None:
            vmem_limit = int(min(budget, max(need + (4 << 20), 32 << 20)))
            return dt, vmem_limit
    raise NotImplementedError(
        "embedding table too large for a VMEM-resident gather; "
        "TODO(synk): manual DMA row-gather path (memory_space=pl.ANY).")


# ---------------------------------------------------------------------------
# Forward wrapper (== nn.Embedding(vocab, d_model)(ids))
# ---------------------------------------------------------------------------
def embedder_forward(ids, table, *, tokens_per_step=None, d_tile=None,
                     onehot_vocab_max=4096):
    vocab, d_model = table.shape
    table_itemsize = jnp.dtype(table.dtype).itemsize

    lead_shape = ids.shape
    ids_flat = ids.reshape(-1).astype(jnp.int32)
    seq = ids_flat.shape[0]

    use_onehot = vocab <= onehot_vocab_max

    T = tokens_per_step if tokens_per_step is not None else (128 if use_onehot else 32)
    T = int(T)
    if T % 8:                                   # keep output blocks sublane-aligned
        T += 8 - (T % 8)

    d_tile, vmem_limit = _plan(vocab, d_model, table_itemsize, T, use_onehot,
                               d_tile=d_tile)
    assert d_model % d_tile == 0

    num_chunks = pl.cdiv(seq, T)
    padded_seq = num_chunks * T
    num_dtiles = d_model // d_tile

    # Clamp untrusted ids (VMEM reads have no HW bounds check; nn.Embedding
    # would raise on OOB ids instead) and pad the tail chunk with a valid id;
    # padded rows are sliced off below.
    ids32 = jnp.clip(ids_flat, 0, vocab - 1)
    ids_padded = jnp.pad(ids32, (0, padded_seq - seq))

    # v7x core sharding: with >= 2 d-tiles, shard the d-tile axis across the
    # two TensorCores (each streams a distinct table slab exactly once) and
    # keep the chunk axis sequential; otherwise parallelize the chunk axis.
    if num_dtiles >= 2:
        dims = ("parallel", "arbitrary")
    else:
        dims = ("parallel", "parallel")

    cparams = pltpu.CompilerParams(
        dimension_semantics=dims,
        vmem_limit_bytes=int(vmem_limit),
    )

    cost = pl.CostEstimate(
        flops=(2 * padded_seq * vocab * d_model) if use_onehot else 0,
        transcendentals=0,
        bytes_accessed=int(vocab * d_model * table_itemsize       # table once
                           + padded_seq * d_model * table_itemsize  # output
                           + padded_seq * 4),                       # ids
    )

    if use_onehot:
        ids2d = ids_padded.reshape(padded_seq, 1)
        out_padded = pl.pallas_call(
            _embed_onehot_kernel,
            out_shape=jax.ShapeDtypeStruct((padded_seq, d_model), table.dtype),
            grid=(num_dtiles, num_chunks),
            in_specs=[
                # Per-chunk ids (VMEM-blocked -> no SMEM growth with seq).
                pl.BlockSpec((T, 1), lambda j, i: (i, 0)),
                # Table tile: block index constant along the chunk axis, so
                # each (vocab, d_tile) slab is DMA'd from HBM exactly once.
                pl.BlockSpec((vocab, d_tile), lambda j, i: (0, j)),
            ],
            out_specs=pl.BlockSpec((T, d_tile), lambda j, i: (i, j)),
            compiler_params=cparams,
            cost_estimate=cost,
        )(ids2d, table)
    else:
        kernel = functools.partial(_embed_rowcopy_kernel, tokens_per_step=T)
        out_padded = pl.pallas_call(
            kernel,
            out_shape=jax.ShapeDtypeStruct((padded_seq, d_model), table.dtype),
            grid_spec=pltpu.PrefetchScalarGridSpec(
                num_scalar_prefetch=1,          # ids -> SMEM before grid runs
                grid=(num_dtiles, num_chunks),
                in_specs=[pl.BlockSpec((vocab, d_tile), lambda j, i, ids: (0, j))],
                out_specs=pl.BlockSpec((T, d_tile), lambda j, i, ids: (i, j)),
            ),
            compiler_params=cparams,
            cost_estimate=cost,
        )(ids_padded, table)

    out = out_padded[:seq]
    return out.reshape(*lead_shape, d_model)


if __name__ == "__main__":
    vocab_size = 16
    d_model = 128
    seq = 10   # not a multiple of the chunk size: exercises the tail path

    key = jax.random.PRNGKey(0)
    k_w, k_ids = jax.random.split(key)

    # nn.Embedding weight ~ N(0, 1), shape [vocab_size, d_model]
    table = jax.random.normal(k_w, (vocab_size, d_model), dtype=jnp.float32)
    # token ids (PyTorch long -> int32 on TPU)
    ids = jax.random.randint(k_ids, (seq,), 0, vocab_size, dtype=jnp.int32)

    # One-hot MXU path (small vocab).
    out = jax.block_until_ready(embedder_forward(ids, table))
    ref = table[ids]
    assert out.shape == (seq, d_model)
    assert jnp.array_equal(out, ref), "one-hot gather mismatch"

    # Exact input from the PyTorch spec: x = [0, 1, 0]
    ids_small = jnp.array([0, 1, 0], dtype=jnp.int32)
    out_small = jax.block_until_ready(embedder_forward(ids_small, table))
    assert out_small.shape == (3, d_model)
    assert jnp.array_equal(out_small, table[ids_small]), "small-ids mismatch"

    # Row-copy fallback path (forced by lowering the one-hot vocab threshold).
    out_fb = jax.block_until_ready(
        embedder_forward(ids, table, onehot_vocab_max=0))
    assert jnp.array_equal(out_fb, ref), "row-copy fallback mismatch"

    print("KERNEL_OK")
</pallas_src>

<mosaic_0001>
module attributes {stable_mosaic.version = 11 : i64} {
  func.func @_embed_onehot_kernel(%arg0: i32, %arg1: i32, %arg2: memref<128x1xi32, #tpu.memory_space<vmem>>, %arg3: memref<16x128xf32, #tpu.memory_space<vmem>>, %arg4: memref<128x128xf32, #tpu.memory_space<vmem>>) attributes {dimension_semantics = [#tpu.dimension_semantics<parallel>, #tpu.dimension_semantics<parallel>], iteration_bounds = array<i64: 1, 1>, scalar_prefetch = 0 : i64, scratch_operands = 0 : i64, tpu.core_type = #tpu.core_type<tc>, window_params = [{transform_indices = @transform_0, window_bounds = array<i64: 128, 1>}, {transform_indices = @transform_1, window_bounds = array<i64: 16, 128>}, {transform_indices = @transform_2, window_bounds = array<i64: 128, 128>}]} {
    %c0 = arith.constant 0 : index
    %c0_0 = arith.constant 0 : index
    %0 = vector.load %arg2[%c0, %c0_0] : memref<128x1xi32, #tpu.memory_space<vmem>>, vector<128x1xi32>
    %1 = tpu.iota {dimensions = array<i32: 1>} : vector<128x16xi32>
    %2 = vector.broadcast %0 : vector<128x1xi32> to vector<128x16xi32>
    %3 = arith.cmpi eq, %2, %1 : vector<128x16xi32>
    %4 = arith.extui %3 : vector<128x16xi1> to vector<128x16xi32>
    %5 = arith.sitofp %4 : vector<128x16xi32> to vector<128x16xf32>
    %c0_1 = arith.constant 0 : index
    %c0_2 = arith.constant 0 : index
    %6 = vector.load %arg3[%c0_1, %c0_2] : memref<16x128xf32, #tpu.memory_space<vmem>>, vector<16x128xf32>
    %cst = arith.constant dense<0.000000e+00> : vector<128x128xf32>
    %7 = tpu.matmul %5, %6, %cst {dimension_numbers = #tpu.dot_dimension_numbers<[1], [0], [0], [1], [0, 0, 1, 1], [], []>} : vector<128x16xf32>, vector<16x128xf32>, vector<128x128xf32> -> vector<128x128xf32>
    %c0_3 = arith.constant 0 : index
    %c0_4 = arith.constant 0 : index
    %8 = vector.load %arg4[%c0_3, %c0_4] : memref<128x128xf32, #tpu.memory_space<vmem>>, vector<128x128xf32>
    tpu.vector_store %arg4[%c0_3, %c0_4], %7 {strides = array<i32>} : memref<128x128xf32, #tpu.memory_space<vmem>>, vector<128x128xf32>,
    return
  }
  func.func @transform_0(%arg0: i32, %arg1: i32) -> (i32, i32) {
    %c0_i32 = arith.constant 0 : i32
    %c0_i32_0 = arith.constant 0 : i32
    return %arg1, %c0_i32 : i32, i32
  }
  func.func @transform_1(%arg0: i32, %arg1: i32) -> (i32, i32) {
    %c0_i32 = arith.constant 0 : i32
    %c0_i32_0 = arith.constant 0 : i32
    return %c0_i32, %arg0 : i32, i32
  }
  func.func @transform_2(%arg0: i32, %arg1: i32) -> (i32, i32) {
    %c0_i32 = arith.constant 0 : i32
    return %arg1, %arg0 : i32, i32
  }
}

</mosaic_0001>

<bundles_post_ra>
// kernel: tpu_custom_call.1
= control target key start
LH: loop header
LB: loop body
LE: loop exit
PB: predicated region body
PF: predicated region fallthrough
CT: control target
= control target key end

     0   :  { %v469_v2 = vmov 0   ;;  %s589_s0 = inlined_call_operand.vmem [shape: s32[128,1], index: 0, kind: input, shape index: {}]   ;;  %s590_s1 = inlined_call_operand.vmem [shape: f32[16,128], index: 1, kind: input, shape index: {}]   ;;  %s591_s2 = inlined_call_operand.hbm [shape: f32[128,128], index: 2, kind: output, shape index: {}]  }
   0x1   :  { %v13_v0 = vld [vmem:[%s589_s0 + $0x8] sm:$0xff]  ;;  %v12_v1 = vld [vmem:[%s589_s0] sm:$0xff]  ;;  %444 = vset.pattern.permute.xlu1 %v469_v2  ;;  %443 = vset.pattern.permute.xlu0 %v469_v2 }
   0x2   :  { %34 = vperm.xlu1 %444, %v13_v0   ;;  %31 = vperm.xlu0 %443, %v12_v1   ;;  %v21_v3 = vld [vmem:[%s589_s0 + $0x48] sm:$0xff]  ;;  %v20_v4 = vld [vmem:[%s589_s0 + $0x40] sm:$0xff] }
   0x3   :  { %v126_v5 = vld [vmem:[%s590_s1] sm:$0xff]  ;;  %v127_v6 = vld [vmem:[%s590_s1 + $0x8] sm:$0xff] }
   0x4   :  { %v432_v7 = vpack.c.bf16 %v127_v6, %v126_v5 }
   0x6   :  { %58 = vperm.xlu1 %444, %v21_v3   ;;  %55 = vperm.xlu0 %443, %v20_v4  }
   0x7   :  { %7 = vsyncpa [#allocation3], 0  ;;  %v22_v8 = vld [vmem:[%s589_s0 + $0x50] sm:$0xff]  ;;  %433 = vmatprep.subr.bf16.mxu0 %v432_v7  ;;  %436 = vmatprep.subr.bf16.mxu1 %v432_v7  ;;  %v23_v10 = vld [vmem:[%s589_s0 + $0x58] sm:$0xff]  ;;  %v28_v20 = vlaneseq  ;;  %vm128_vm0 = vcmask 130048   ;;  %v470_v24 = vmov 0.0  }
   0x8   :  { %v14_v9 = vld [vmem:[%s589_s0 + $0x10] sm:$0xff]  ;;  %435 = vmatpush3.bf16.msra.mxu0 %v432_v7  ;;  %437 = vmatpush3.bf16.msra.mxu1 %v432_v7  ;;  %v15_v11 = vld [vmem:[%s589_s0 + $0x18] sm:$0xff]  ;;  %v24_v12 = vld [vmem:[%s589_s0 + $0x60] sm:$0xff] }
   0x9   :  { %v16_v13 = vld [vmem:[%s589_s0 + $0x20] sm:$0xff]  ;;  %v25_v14 = vld [vmem:[%s589_s0 + $0x68] sm:$0xff]  ;;  %v26_v16 = vld [vmem:[%s589_s0 + $0x70] sm:$0xff]  ;;  %v543_v21 = vand.u32 127, %v28_v20 }
   0xa   :  { %61 = vperm.xlu1 %444, %v22_v8   ;;  %37 = vperm.xlu0 %443, %v14_v9   ;;  %v17_v15 = vld [vmem:[%s589_s0 + $0x28] sm:$0xff]  ;;  %v18_v17 = vld [vmem:[%s589_s0 + $0x30] sm:$0xff]  ;;  %v27_v18 = vld [vmem:[%s589_s0 + $0x78] sm:$0xff] }
   0xb   :  { %v19_v19 = vld [vmem:[%s589_s0 + $0x38] sm:$0xff]  ;;  %s471_s0 = smov [#allocation2]  }
   0xc   :  { %s343_s16 = sshll.u32 %s471_s0, 4  ;;  %s344_s16 = int_to_ptr.vmem [resolvable:$true] %s343_s16 }
   0xd   :  { %s445_s17 = scalar_lea.vmem %s344_s16, 2048  ;;  %p450_p1 = scmp.lt.s32.totalorder %s344_s16, %s344_s16 }
   0xe   :  { %64 = vperm.xlu1 %444, %v23_v10   ;;  %40 = vperm.xlu0 %443, %v15_v11   ;;  %p446_p0 = scmp.ne.s32.totalorder %s344_s16, %s445_s17  ;;  %p451_p2 = scmp.lt.s32.totalorder %s445_s17, %s445_s17 }
  0x10   :  { %p452_p3 = por %p451_p2, %p450_p1 }
  0x12   :  { %67 = vperm.xlu1 %444, %v24_v12   ;;  %43 = vperm.xlu0 %443, %v16_v13   ;;  %p453_p4 = pnand %p452_p3, %p446_p0 }
  0x16   :  { %70 = vperm.xlu1 %444, %v25_v14   ;;  %46 = vperm.xlu0 %443, %v17_v15  }
  0x1a   :  { %73 = vperm.xlu1 %444, %v26_v16   ;;  %49 = vperm.xlu0 %443, %v18_v17  }
  0x1e   :  { %76 = vperm.xlu1 %444, %v27_v18   ;;  %52 = vperm.xlu0 %443, %v19_v19  }
  0x81   :  { %v35_v22 = vpop.permute.xlu1 %34  ;;  %v32_v23 = vpop.permute.xlu0 %31 }
  0x82   :  { %vm79_vm1 = vcmp.eq.s32.totalorder %v35_v22, %v543_v21  ;;  %vm78_vm2 = vcmp.eq.s32.totalorder %v32_v23, %v543_v21 }
  0x83   :  { %v355_v25 = vsel %vm79_vm1, 1.0, %v470_v24  ;;  %v354_v26 = vsel %vm78_vm2, 1.0, %v470_v24 }
  0x84   :  { %408 = vmatprep.mubr.msk.f32.mxu0 %vm128_vm0, %v354_v26 }
  0x85   :  { %v59_v27 = vpop.permute.xlu1 %58  ;;  %409 = vmatmul.mubr.msk.f32.vlgmr.msra.gmra.mrb[0].mxu0 %vm128_vm0, %v355_v25  ;;  %v56_v28 = vpop.permute.xlu0 %55 }
  0x86   :  { %vm87_vm3 = vcmp.eq.s32.totalorder %v59_v27, %v543_v21  ;;  %vm86_vm4 = vcmp.eq.s32.totalorder %v56_v28, %v543_v21 }
  0x87   :  { %v363_v29 = vsel %vm87_vm3, 1.0, %v470_v24  ;;  %v362_v30 = vsel %vm86_vm4, 1.0, %v470_v24 }
  0x88   :  { %420 = vmatprep.mubr.msk.f32.mxu1 %vm128_vm0, %v362_v30 }
  0x89   :  { %v62_v31 = vpop.permute.xlu1 %61  ;;  %421 = vmatmul.mubr.msk.f32.vlgmr.msra.gmra.mrb[0].mxu1 %vm128_vm0, %v363_v29  ;;  %v38_v32 = vpop.permute.xlu0 %37 }
  0x8a   :  { %vm88_vm5 = vcmp.eq.s32.totalorder %v62_v31, %v543_v21  ;;  %vm80_vm6 = vcmp.eq.s32.totalorder %v38_v32, %v543_v21 }
  0x8b   :  { %v364_v33 = vsel %vm88_vm5, 1.0, %v470_v24  ;;  %v356_v34 = vsel %vm80_vm6, 1.0, %v470_v24 }
  0x8c   :  { %411 = vmatprep.mubr.msk.f32.mxu0 %vm128_vm0, %v356_v34  ;;  %423 = vmatprep.mubr.msk.f32.mxu1 %vm128_vm0, %v364_v33 }
  0x8d   :  { %v65_v35 = vpop.permute.xlu1 %64  ;;  %v41_v36 = vpop.permute.xlu0 %40 }
  0x8e   :  { %vm89_vm7 = vcmp.eq.s32.totalorder %v65_v35, %v543_v21  ;;  %vm81_vm8 = vcmp.eq.s32.totalorder %v41_v36, %v543_v21 }
  0x8f   :  { %v365_v37 = vsel %vm89_vm7, 1.0, %v470_v24  ;;  %v357_v38 = vsel %vm81_vm8, 1.0, %v470_v24 }
  0x90   :  { %412 = vmatmul.mubr.msk.f32.gmra.mrb[2].mxu0 %vm128_vm0, %v357_v38  ;;  %424 = vmatmul.mubr.msk.f32.gmra.mrb[2].mxu1 %vm128_vm0, %v365_v37 }
  0x91   :  { %v68_v39 = vpop.permute.xlu1 %67  ;;  %v44_v40 = vpop.permute.xlu0 %43 }
  0x92   :  { %vm90_vm9 = vcmp.eq.s32.totalorder %v68_v39, %v543_v21  ;;  %vm82_vm10 = vcmp.eq.s32.totalorder %v44_v40, %v543_v21 }
  0x93   :  { %v366_v41 = vsel %vm90_vm9, 1.0, %v470_v24  ;;  %v358_v42 = vsel %vm82_vm10, 1.0, %v470_v24 }
  0x94   :  { %414 = vmatprep.mubr.msk.f32.mxu0 %vm128_vm0, %v358_v42  ;;  %426 = vmatprep.mubr.msk.f32.mxu1 %vm128_vm0, %v366_v41 }
  0x95   :  { %v71_v43 = vpop.permute.xlu1 %70  ;;  %v47_v44 = vpop.permute.xlu0 %46 }
  0x96   :  { %vm91_vm11 = vcmp.eq.s32.totalorder %v71_v43, %v543_v21  ;;  %vm83_vm12 = vcmp.eq.s32.totalorder %v47_v44, %v543_v21 }
  0x97   :  { %v367_v45 = vsel %vm91_vm11, 1.0, %v470_v24  ;;  %v359_v46 = vsel %vm83_vm12, 1.0, %v470_v24 }
  0x98   :  { %415 = vmatmul.mubr.msk.f32.gmra.mrb[4].mxu0 %vm128_vm0, %v359_v46  ;;  %427 = vmatmul.mubr.msk.f32.gmra.mrb[4].mxu1 %vm128_vm0, %v367_v45 }
  0x99   :  { %v74_v47 = vpop.permute.xlu1 %73  ;;  %v50_v48 = vpop.permute.xlu0 %49 }
  0x9a   :  { %vm92_vm13 = vcmp.eq.s32.totalorder %v74_v47, %v543_v21  ;;  %vm84_vm14 = vcmp.eq.s32.totalorder %v50_v48, %v543_v21 }
  0x9b   :  { %v368_v49 = vsel %vm92_vm13, 1.0, %v470_v24  ;;  %v360_v50 = vsel %vm84_vm14, 1.0, %v470_v24 }
  0x9c   :  { %417 = vmatprep.mubr.msk.f32.mxu0 %vm128_vm0, %v360_v50  ;;  %429 = vmatprep.mubr.msk.f32.mxu1 %vm128_vm0, %v368_v49 }
  0x9d   :  { %v77_v51 = vpop.permute.xlu1 %76  ;;  %v53_v52 = vpop.permute.xlu0 %52 }
  0x9e   :  { %vm93_vm15 = vcmp.eq.s32.totalorder %v77_v51, %v543_v21  ;;  %vm85_vm1 = vcmp.eq.s32.totalorder %v53_v52, %v543_v21 }
  0x9f   :  { %v369_v53 = vsel %vm93_vm15, 1.0, %v470_v24  ;;  %v361_v54 = vsel %vm85_vm1, 1.0, %v470_v24 }
  0xa0   :  { %418 = vmatmul.mubr.msk.f32.gmra.mrb[6].mxu0 %vm128_vm0, %v361_v54  ;;  %430 = vmatmul.mubr.msk.f32.gmra.mrb[6].mxu1 %vm128_vm0, %v369_v53 }
 0x158   :  { %v410_v55 = vpop.f32.mrb[0].mxu0 }
 0x159   :  { %323 = vst [vmem:[#allocation2 + $0x8] sm:$0xff] %v410_v55  ;;  %v243_v56 = vpop.f32.mrb[1].mxu0 }
 0x15a   :  { %322 = vst [vmem:[#allocation2] sm:$0xff] %v243_v56 }
 0x15c   :  { %v422_v57 = vpop.f32.mrb[0].mxu1 }
 0x15d   :  { %331 = vst [vmem:[#allocation2 + $0x48] sm:$0xff] %v422_v57  ;;  %v283_v58 = vpop.f32.mrb[1].mxu1 }
 0x15e   :  { %330 = vst [vmem:[#allocation2 + $0x40] sm:$0xff] %v283_v58 }
 0x163   :  { %v413_v59 = vpop.f32.mrb[2].mxu0  ;;  %v425_v60 = vpop.f32.mrb[2].mxu1 }
 0x164   :  { %325 = vst [vmem:[#allocation2 + $0x18] sm:$0xff] %v413_v59  ;;  %333 = vst [vmem:[#allocation2 + $0x58] sm:$0xff] %v425_v60  ;;  %v253_v61 = vpop.f32.mrb[3].mxu0  ;;  %v293_v62 = vpop.f32.mrb[3].mxu1 }
 0x165   :  { %324 = vst [vmem:[#allocation2 + $0x10] sm:$0xff] %v253_v61  ;;  %332 = vst [vmem:[#allocation2 + $0x50] sm:$0xff] %v293_v62 }
 0x16b   :  { %v416_v63 = vpop.f32.mrb[4].mxu0  ;;  %v428_v0 = vpop.f32.mrb[4].mxu1 }
 0x16c   :  { %327 = vst [vmem:[#allocation2 + $0x28] sm:$0xff] %v416_v63  ;;  %335 = vst [vmem:[#allocation2 + $0x68] sm:$0xff] %v428_v0  ;;  %v263_v1 = vpop.f32.mrb[5].mxu0  ;;  %v303_v2 = vpop.f32.mrb[5].mxu1 }
 0x16d   :  { %326 = vst [vmem:[#allocation2 + $0x20] sm:$0xff] %v263_v1  ;;  %334 = vst [vmem:[#allocation2 + $0x60] sm:$0xff] %v303_v2 }
 0x173   :  { %v419_v3 = vpop.f32.mrb[6].mxu0  ;;  %v431_v4 = vpop.f32.mrb[6].mxu1 }
 0x174   :  { %329 = vst [vmem:[#allocation2 + $0x38] sm:$0xff] %v419_v3  ;;  %337 = vst [vmem:[#allocation2 + $0x78] sm:$0xff] %v431_v4  ;;  %v273_v5 = vpop.f32.mrb[7].mxu0  ;;  %v313_v6 = vpop.f32.mrb[7].mxu1 }
 0x175   :  { %328 = vst [vmem:[#allocation2 + $0x30] sm:$0xff] %v273_v5  ;;  %336 = vst [vmem:[#allocation2 + $0x70] sm:$0xff] %v313_v6 }
 0x176   :  { %456 = shalt.err (!%p453_p4)
}
 0x177   :  { %s457_s20 = scalar_lea.hbm %s591_s2, 2048 }
 0x178   :  { %p458_p5 = scmp.ne.s32.totalorder %s591_s2, %s457_s20  ;;  %p461_p6 = scmp.lt.u32.totalorder %s457_s20, %s591_s2 }
 0x17a   :  { %p463_p7 = pnand %p461_p6, %p458_p5 }
 0x17c   :  { %466 = shalt.err (!%p463_p7)
}
 0x17d   :  { %s472_s25 = smov 128   ;;  %s473_s1 = smov 8  }
 0x17e   :  { %349 = dma.vmem_to_hbm [thread:$0]  %s344_s16, 2048, %s591_s2, [#allocation3], %s472_s25, %s472_s25, %s473_s1  }
 0x17f   :  { %467 = dma.done.wait [#allocation3], 2048  }
 0x180   :  { %468 = vsyncadd [#allocation3], 4294965248 }
 0x181   :  { %353 = vsyncpa [#allocation3], 1 }

</bundles_post_ra>
